<compile_context>
chip_gen: v6e
topology: v6e:2x2x1
jax: 0.10.0
libtpu: 0.0.40
codegen_flags: <defaults>
</compile_context>

<pallas_src>
import jax
import jax.numpy as jnp
from jax.experimental import pallas as pl
from jax.experimental.pallas import tpu as pltpu


# ---------------------------------------------------------------------------
# Problem sizes (mirrors the PyTorch script)
# ---------------------------------------------------------------------------
BAG_OF_WORDS_EMBEDDING_LENGTH = 32
LAST_ITEM_CLICK = 64
CONTEXT_FEATURE_SIZE = LAST_ITEM_CLICK + BAG_OF_WORDS_EMBEDDING_LENGTH          # 96
ITEM_FEATURE_SIZE = 4 + BAG_OF_WORDS_EMBEDDING_LENGTH                           # 36
STATIC_USER_FEATURE_SIZE = 20                                                    # ctor arg (free choice)

HIDDEN1 = 128
HIDDEN2 = 64


def _round_up(x, m):
    return (x + m - 1) // m * m


# ---------------------------------------------------------------------------
# Kernel: fused two-tower forward for one batch block of TB rows.
# ---------------------------------------------------------------------------
def two_tower_kernel(
    item_ref, user_ref, ctx_ref,                       # (TB, 36) (TB, 20) (TB, 96)  f32
    w1i_ref, w1u_ref, w1c_ref, b1_ref,                 # fused layer-1 (bf16 W, f32 b)
    w2_ref, b2_ref,                                    # fused block-diag layer-2
    out_ref,                                           # (1, 1, TB) f32, lane-dense
):
    # bf16 on the MXU path, f32 accumulation + f32 elementwise.
    item = item_ref[...].astype(jnp.bfloat16)
    user = user_ref[...].astype(jnp.bfloat16)
    ctx = ctx_ref[...].astype(jnp.bfloat16)

    b1 = b1_ref[...]                                   # (1, 256) f32 (loaded once)
    b2 = b2_ref[...]                                   # (1, 128) f32

    # Fused layer 1: item tower in lanes 0:128, user tower in lanes 128:256.
    h1 = jnp.dot(item, w1i_ref[...], preferred_element_type=jnp.float32)
    h1 = h1 + jnp.dot(user, w1u_ref[...], preferred_element_type=jnp.float32)
    h1 = h1 + jnp.dot(ctx, w1c_ref[...], preferred_element_type=jnp.float32)
    h1 = jnp.maximum(h1 + b1, 0.0).astype(jnp.bfloat16)            # (TB, 256)

    # Fused layer 2 (block-diagonal): item_emb lanes 0:64, user_emb lanes 64:128.
    emb = jnp.dot(h1, w2_ref[...], preferred_element_type=jnp.float32)
    emb = jnp.maximum(emb + b2, 0.0)                                # (TB, 128) f32

    # Per-row dot product of the two halves:
    #   roll by 64 lanes (XLU) -> both halves of `prod` contain item_emb*user_emb,
    #   then reduce lanes with a tiny NT matmul (MXU) so the result is lane-dense.
    prod = emb * pltpu.roll(emb, shift=HIDDEN2, axis=1)             # (TB, 128)
    half = jnp.full((1, 2 * HIDDEN2), 0.5, dtype=jnp.float32)       # sums both halves -> x0.5
    dot_row = jax.lax.dot_general(
        half, prod, (((1,), (1,)), ((), ())),
        preferred_element_type=jnp.float32)                         # (1, TB)

    out_ref[...] = jax.nn.sigmoid(dot_row)[None, :, :]              # (1, 1, TB)


# ---------------------------------------------------------------------------
# Wrapper: batch tiling, padding, BlockSpecs, output re-layout.
# ---------------------------------------------------------------------------
def two_tower_forward(item_features, user_features, context_features, params,
                      *, block_rows=512):
    # TODO(synk): save_embeddings_flag=True early-return (item embeddings only) is not
    # exposed; this kernel implements the default click-probability forward path.
    B = item_features.shape[0]
    d_item = item_features.shape[1]
    d_user = user_features.shape[1]
    d_ctx = context_features.shape[1]

    TB = _round_up(min(block_rows, _round_up(B, 8)), 8)
    num_blocks = pl.cdiv(B, TB)
    B_pad = num_blocks * TB
    if B_pad != B:
        pad = ((0, B_pad - B), (0, 0))
        item_features = jnp.pad(item_features, pad)
        user_features = jnp.pad(user_features, pad)
        context_features = jnp.pad(context_features, pad)

    def row_spec(d):
        return pl.BlockSpec((TB, d), lambda b: (b, 0))

    def const_spec(arr):
        nd = arr.ndim
        return pl.BlockSpec(arr.shape, lambda b: (0,) * nd)

    args = (
        item_features, user_features, context_features,
        params["w1_item"], params["w1_user"], params["w1_ctx"], params["b1"],
        params["w2"], params["b2"],
    )
    in_specs = [
        row_spec(d_item), row_spec(d_user), row_spec(d_ctx),
        const_spec(params["w1_item"]), const_spec(params["w1_user"]),
        const_spec(params["w1_ctx"]), const_spec(params["b1"]),
        const_spec(params["w2"]), const_spec(params["b2"]),
    ]

    out = pl.pallas_call(
        two_tower_kernel,
        out_shape=jax.ShapeDtypeStruct((num_blocks, 1, TB), jnp.float32),
        grid=(num_blocks,),
        in_specs=in_specs,
        out_specs=pl.BlockSpec((1, 1, TB), lambda b: (b, 0, 0)),
        compiler_params=pltpu.CompilerParams(dimension_semantics=("parallel",)),
    )(*args)

    return out.reshape(B_pad, 1)[:B]


# ---------------------------------------------------------------------------
# Parameter init (PyTorch nn.Linear default: U(-1/sqrt(fan_in), +1/sqrt(fan_in))),
# then packed into the fused block-diagonal layout used by the kernel.
# Weights on the MXU path are stored in bf16; biases stay f32.
# ---------------------------------------------------------------------------
def init_params(key, static_user_feature_size=STATIC_USER_FEATURE_SIZE):
    def linear(key, fan_in, fan_out):
        kw, kb = jax.random.split(key)
        bound = 1.0 / (fan_in ** 0.5)
        w = jax.random.uniform(kw, (fan_in, fan_out), jnp.float32, -bound, bound)
        b = jax.random.uniform(kb, (fan_out,), jnp.float32, -bound, bound)
        # round-trip through bf16 so the reference sees exactly the kernel's weights
        return w.astype(jnp.bfloat16).astype(jnp.float32), b

    k1, k2, k3, k4 = jax.random.split(key, 4)
    wi1, bi1 = linear(k1, ITEM_FEATURE_SIZE, HIDDEN1)
    wi2, bi2 = linear(k2, HIDDEN1, HIDDEN2)
    user_in = static_user_feature_size + CONTEXT_FEATURE_SIZE
    wu1, bu1 = linear(k3, user_in, HIDDEN1)
    wu2, bu2 = linear(k4, HIDDEN1, HIDDEN2)

    # Fused layer-1: columns 0:128 = item tower, 128:256 = user tower.
    w1_item = jnp.zeros((ITEM_FEATURE_SIZE, 2 * HIDDEN1), jnp.float32)
    w1_item = w1_item.at[:, :HIDDEN1].set(wi1)
    w1_user = jnp.zeros((static_user_feature_size, 2 * HIDDEN1), jnp.float32)
    w1_user = w1_user.at[:, HIDDEN1:].set(wu1[:static_user_feature_size])
    w1_ctx = jnp.zeros((CONTEXT_FEATURE_SIZE, 2 * HIDDEN1), jnp.float32)
    w1_ctx = w1_ctx.at[:, HIDDEN1:].set(wu1[static_user_feature_size:])
    b1 = jnp.concatenate([bi1, bu1])[None, :]                       # (1, 256)

    # Fused layer-2 (block-diagonal): item_emb lanes 0:64, user_emb lanes 64:128.
    w2 = jnp.zeros((2 * HIDDEN1, 2 * HIDDEN2), jnp.float32)
    w2 = w2.at[:HIDDEN1, :HIDDEN2].set(wi2).at[HIDDEN1:, HIDDEN2:].set(wu2)
    b2 = jnp.concatenate([bi2, bu2])[None, :]                       # (1, 128)

    return dict(
        # fused kernel params
        w1_item=w1_item.astype(jnp.bfloat16),
        w1_user=w1_user.astype(jnp.bfloat16),
        w1_ctx=w1_ctx.astype(jnp.bfloat16),
        b1=b1,
        w2=w2.astype(jnp.bfloat16),
        b2=b2,
        # unfused f32 copies for the reference check
        wi1=wi1, bi1=bi1, wi2=wi2, bi2=bi2,
        wu1=wu1, bu1=bu1, wu2=wu2, bu2=bu2,
    )


def reference_forward(item_features, user_features, context_features, params):
    """Plain-JAX reference mirroring the PyTorch module structure."""
    hi = jnp.maximum(item_features @ params["wi1"] + params["bi1"], 0.0)
    item_emb = jnp.maximum(hi @ params["wi2"] + params["bi2"], 0.0)
    user_ctx = jnp.concatenate([user_features, context_features], axis=1)
    hu = jnp.maximum(user_ctx @ params["wu1"] + params["bu1"], 0.0)
    user_emb = jnp.maximum(hu @ params["wu2"] + params["bu2"], 0.0)
    dot = jnp.sum(item_emb * user_emb, axis=1, keepdims=True)
    return jax.nn.sigmoid(dot)


if __name__ == "__main__":
    key = jax.random.PRNGKey(0)
    kp, ki, ku, kc = jax.random.split(key, 4)

    # NOTE: B=8 keeps the demo small; the kernel is launch-overhead bound here.
    # Real wins (grid pipelining, megacore, bf16 MXU) only show at B in the thousands.
    B = 8
    params = init_params(kp)
    item_features = jax.random.normal(ki, (B, ITEM_FEATURE_SIZE), jnp.float32)
    user_features = jax.random.normal(ku, (B, STATIC_USER_FEATURE_SIZE), jnp.float32)
    context_features = jax.random.normal(kc, (B, CONTEXT_FEATURE_SIZE), jnp.float32)

    out = two_tower_forward(item_features, user_features, context_features, params)
    out = jax.block_until_ready(out)

    ref = reference_forward(item_features, user_features, context_features, params)
    assert out.shape == (B, 1)
    # bf16 MXU path vs f32 reference -> relaxed tolerance
    assert jnp.allclose(out, ref, atol=2e-2, rtol=2e-2), "mismatch vs reference"

    print("KERNEL_OK")
</pallas_src>

<mosaic_0001>
module attributes {stable_mosaic.version = 11 : i64} {
  func.func @two_tower_kernel(%arg0: i32, %arg1: memref<8x36xf32, #tpu.memory_space<vmem>>, %arg2: memref<8x20xf32, #tpu.memory_space<vmem>>, %arg3: memref<8x96xf32, #tpu.memory_space<vmem>>, %arg4: memref<36x256xbf16, #tpu.memory_space<vmem>>, %arg5: memref<20x256xbf16, #tpu.memory_space<vmem>>, %arg6: memref<96x256xbf16, #tpu.memory_space<vmem>>, %arg7: memref<1x256xf32, #tpu.memory_space<vmem>>, %arg8: memref<256x128xbf16, #tpu.memory_space<vmem>>, %arg9: memref<1x128xf32, #tpu.memory_space<vmem>>, %arg10: memref<1x1x8xf32, #tpu.memory_space<vmem>>) attributes {dimension_semantics = [#tpu.dimension_semantics<parallel>], iteration_bounds = array<i64: 1>, scalar_prefetch = 0 : i64, scratch_operands = 0 : i64, tpu.core_type = #tpu.core_type<tc>, window_params = [{transform_indices = @transform_0, window_bounds = array<i64: 8, 36>}, {transform_indices = @transform_1, window_bounds = array<i64: 8, 20>}, {transform_indices = @transform_2, window_bounds = array<i64: 8, 96>}, {pipeline_mode = #tpu.pipeline_mode<synchronous>, transform_indices = @transform_3, window_bounds = array<i64: 36, 256>}, {pipeline_mode = #tpu.pipeline_mode<synchronous>, transform_indices = @transform_4, window_bounds = array<i64: 20, 256>}, {pipeline_mode = #tpu.pipeline_mode<synchronous>, transform_indices = @transform_5, window_bounds = array<i64: 96, 256>}, {pipeline_mode = #tpu.pipeline_mode<synchronous>, transform_indices = @transform_6, window_bounds = array<i64: 1, 256>}, {pipeline_mode = #tpu.pipeline_mode<synchronous>, transform_indices = @transform_7, window_bounds = array<i64: 256, 128>}, {pipeline_mode = #tpu.pipeline_mode<synchronous>, transform_indices = @transform_8, window_bounds = array<i64: 1, 128>}, {transform_indices = @transform_9, window_bounds = array<i64: 1, 1, 8>}]} {
    %c0 = arith.constant 0 : index
    %c0_0 = arith.constant 0 : index
    %0 = vector.load %arg1[%c0, %c0_0] : memref<8x36xf32, #tpu.memory_space<vmem>>, vector<8x36xf32>
    %1 = arith.truncf %0 : vector<8x36xf32> to vector<8x36xbf16>
    %c0_1 = arith.constant 0 : index
    %c0_2 = arith.constant 0 : index
    %2 = vector.load %arg2[%c0_1, %c0_2] : memref<8x20xf32, #tpu.memory_space<vmem>>, vector<8x20xf32>
    %3 = arith.truncf %2 : vector<8x20xf32> to vector<8x20xbf16>
    %c0_3 = arith.constant 0 : index
    %c0_4 = arith.constant 0 : index
    %4 = vector.load %arg3[%c0_3, %c0_4] : memref<8x96xf32, #tpu.memory_space<vmem>>, vector<8x96xf32>
    %5 = arith.truncf %4 : vector<8x96xf32> to vector<8x96xbf16>
    %c0_5 = arith.constant 0 : index
    %c0_6 = arith.constant 0 : index
    %6 = vector.load %arg7[%c0_5, %c0_6] : memref<1x256xf32, #tpu.memory_space<vmem>>, vector<1x256xf32>
    %c0_7 = arith.constant 0 : index
    %c0_8 = arith.constant 0 : index
    %7 = vector.load %arg9[%c0_7, %c0_8] : memref<1x128xf32, #tpu.memory_space<vmem>>, vector<1x128xf32>
    %c0_9 = arith.constant 0 : index
    %c0_10 = arith.constant 0 : index
    %8 = vector.load %arg4[%c0_9, %c0_10] : memref<36x256xbf16, #tpu.memory_space<vmem>>, vector<36x256xbf16>
    %cst = arith.constant dense<0.000000e+00> : vector<8x256xf32>
    %9 = tpu.matmul %1, %8, %cst {dimension_numbers = #tpu.dot_dimension_numbers<[1], [0], [0], [1], [0, 0, 1, 1], [], []>} : vector<8x36xbf16>, vector<36x256xbf16>, vector<8x256xf32> -> vector<8x256xf32>
    %c0_11 = arith.constant 0 : index
    %c0_12 = arith.constant 0 : index
    %10 = vector.load %arg5[%c0_11, %c0_12] : memref<20x256xbf16, #tpu.memory_space<vmem>>, vector<20x256xbf16>
    %cst_13 = arith.constant dense<0.000000e+00> : vector<8x256xf32>
    %11 = tpu.matmul %3, %10, %cst_13 {dimension_numbers = #tpu.dot_dimension_numbers<[1], [0], [0], [1], [0, 0, 1, 1], [], []>} : vector<8x20xbf16>, vector<20x256xbf16>, vector<8x256xf32> -> vector<8x256xf32>
    %12 = arith.addf %9, %11 : vector<8x256xf32>
    %c0_14 = arith.constant 0 : index
    %c0_15 = arith.constant 0 : index
    %13 = vector.load %arg6[%c0_14, %c0_15] : memref<96x256xbf16, #tpu.memory_space<vmem>>, vector<96x256xbf16>
    %cst_16 = arith.constant dense<0.000000e+00> : vector<8x256xf32>
    %14 = tpu.matmul %5, %13, %cst_16 {dimension_numbers = #tpu.dot_dimension_numbers<[1], [0], [0], [1], [0, 0, 1, 1], [], []>} : vector<8x96xbf16>, vector<96x256xbf16>, vector<8x256xf32> -> vector<8x256xf32>
    %15 = arith.addf %12, %14 : vector<8x256xf32>
    %16 = vector.broadcast %6 : vector<1x256xf32> to vector<8x256xf32>
    %17 = arith.addf %15, %16 : vector<8x256xf32>
    %cst_17 = arith.constant 0.000000e+00 : f32
    %18 = vector.broadcast %cst_17 : f32 to vector<8x256xf32>
    %19 = arith.maximumf %17, %18 : vector<8x256xf32>
    %20 = arith.truncf %19 : vector<8x256xf32> to vector<8x256xbf16>
    %c0_18 = arith.constant 0 : index
    %c0_19 = arith.constant 0 : index
    %21 = vector.load %arg8[%c0_18, %c0_19] : memref<256x128xbf16, #tpu.memory_space<vmem>>, vector<256x128xbf16>
    %cst_20 = arith.constant dense<0.000000e+00> : vector<8x128xf32>
    %22 = tpu.matmul %20, %21, %cst_20 {dimension_numbers = #tpu.dot_dimension_numbers<[1], [0], [0], [1], [0, 0, 1, 1], [], []>} : vector<8x256xbf16>, vector<256x128xbf16>, vector<8x128xf32> -> vector<8x128xf32>
    %23 = vector.broadcast %7 : vector<1x128xf32> to vector<8x128xf32>
    %24 = arith.addf %22, %23 : vector<8x128xf32>
    %cst_21 = arith.constant 0.000000e+00 : f32
    %25 = vector.broadcast %cst_21 : f32 to vector<8x128xf32>
    %26 = arith.maximumf %24, %25 : vector<8x128xf32>
    %c64_i32 = arith.constant 64 : i32
    %27 = tpu.dynamic_rotate %26 by %c64_i32 dim 1 : vector<8x128xf32>, i32 -> vector<8x128xf32>
    %28 = arith.mulf %26, %27 : vector<8x128xf32>
    %cst_22 = arith.constant 5.000000e-01 : f32
    %29 = vector.broadcast %cst_22 : f32 to vector<1x128xf32>
    %cst_23 = arith.constant dense<0.000000e+00> : vector<1x8xf32>
    %30 = tpu.matmul %29, %28, %cst_23 {dimension_numbers = #tpu.dot_dimension_numbers<[1], [1], [0], [0], [0, 0, 1, 0], [], []>} : vector<1x128xf32>, vector<8x128xf32>, vector<1x8xf32> -> vector<1x8xf32>
    %31 = arith.negf %30 : vector<1x8xf32>
    %32 = math.exp %31 : vector<1x8xf32>
    %cst_24 = arith.constant 1.000000e+00 : f32
    %33 = vector.broadcast %cst_24 : f32 to vector<1x8xf32>
    %34 = arith.addf %33, %32 : vector<1x8xf32>
    %35 = arith.divf %33, %34 : vector<1x8xf32>
    %36 = vector.shape_cast %35 : vector<1x8xf32> to vector<1x1x8xf32>
    %c0_25 = arith.constant 0 : index
    %c0_26 = arith.constant 0 : index
    %c0_27 = arith.constant 0 : index
    %37 = vector.load %arg10[%c0_25, %c0_26, %c0_27] : memref<1x1x8xf32, #tpu.memory_space<vmem>>, vector<1x1x8xf32>
    tpu.vector_store %arg10[%c0_25, %c0_26, %c0_27], %36 {strides = array<i32>} : memref<1x1x8xf32, #tpu.memory_space<vmem>>, vector<1x1x8xf32>,
    return
  }
  func.func @transform_0(%arg0: i32) -> (i32, i32) {
    %c0_i32 = arith.constant 0 : i32
    %c0_i32_0 = arith.constant 0 : i32
    return %arg0, %c0_i32 : i32, i32
  }
  func.func @transform_1(%arg0: i32) -> (i32, i32) {
    %c0_i32 = arith.constant 0 : i32
    %c0_i32_0 = arith.constant 0 : i32
    return %arg0, %c0_i32 : i32, i32
  }
  func.func @transform_2(%arg0: i32) -> (i32, i32) {
    %c0_i32 = arith.constant 0 : i32
    %c0_i32_0 = arith.constant 0 : i32
    return %arg0, %c0_i32 : i32, i32
  }
  func.func @transform_3(%arg0: i32) -> (i32, i32) {
    %c0_i32 = arith.constant 0 : i32
    %c0_i32_0 = arith.constant 0 : i32
    %c0_i32_1 = arith.constant 0 : i32
    return %c0_i32, %c0_i32_0 : i32, i32
  }
  func.func @transform_4(%arg0: i32) -> (i32, i32) {
    %c0_i32 = arith.constant 0 : i32
    %c0_i32_0 = arith.constant 0 : i32
    %c0_i32_1 = arith.constant 0 : i32
    return %c0_i32, %c0_i32_0 : i32, i32
  }
  func.func @transform_5(%arg0: i32) -> (i32, i32) {
    %c0_i32 = arith.constant 0 : i32
    %c0_i32_0 = arith.constant 0 : i32
    %c0_i32_1 = arith.constant 0 : i32
    return %c0_i32, %c0_i32_0 : i32, i32
  }
  func.func @transform_6(%arg0: i32) -> (i32, i32) {
    %c0_i32 = arith.constant 0 : i32
    %c0_i32_0 = arith.constant 0 : i32
    %c0_i32_1 = arith.constant 0 : i32
    return %c0_i32, %c0_i32_0 : i32, i32
  }
  func.func @transform_7(%arg0: i32) -> (i32, i32) {
    %c0_i32 = arith.constant 0 : i32
    %c0_i32_0 = arith.constant 0 : i32
    %c0_i32_1 = arith.constant 0 : i32
    return %c0_i32, %c0_i32_0 : i32, i32
  }
  func.func @transform_8(%arg0: i32) -> (i32, i32) {
    %c0_i32 = arith.constant 0 : i32
    %c0_i32_0 = arith.constant 0 : i32
    %c0_i32_1 = arith.constant 0 : i32
    return %c0_i32, %c0_i32_0 : i32, i32
  }
  func.func @transform_9(%arg0: i32) -> (i32, i32, i32) {
    %c0_i32 = arith.constant 0 : i32
    %c0_i32_0 = arith.constant 0 : i32
    %c0_i32_1 = arith.constant 0 : i32
    return %arg0, %c0_i32, %c0_i32_0 : i32, i32, i32
  }
}

</mosaic_0001>

<bundles_post_ra>
// kernel: tpu_custom_call.1
= control target key start
LH: loop header
LB: loop body
LE: loop exit
PB: predicated region body
PF: predicated region fallthrough
CT: control target
= control target key end

     0   :  { %14 = vsyncpa [#allocation3], 0  ;;  %s1111_s0 = inlined_call_operand.hbm [shape: f32[8,36], index: 0, kind: input, shape index: {}]   ;;  %s1112_s1 = inlined_call_operand.hbm [shape: f32[8,20], index: 1, kind: input, shape index: {}]   ;;  %s1113_s2 = inlined_call_operand.hbm [shape: f32[8,96], index: 2, kind: input, shape index: {}]   ;;  %s1114_s3 = inlined_call_operand.hbm [shape: bf16[36,256], index: 3, kind: input, shape index: {}]   ;;  %s1115_s4 = inlined_call_operand.hbm [shape: bf16[20,256], index: 4, kind: input, shape index: {}]   ;;  %s1116_s5 = inlined_call_operand.hbm [shape: bf16[96,256], index: 5, kind: input, shape index: {}]   ;;  %s1117_s6 = inlined_call_operand.vmem [shape: f32[1,256], index: 6, kind: input, shape index: {}]   ;;  %s1118_s7 = inlined_call_operand.hbm [shape: bf16[256,128], index: 7, kind: input, shape index: {}]   ;;  %s1119_s8 = inlined_call_operand.vmem [shape: f32[1,128], index: 8, kind: input, shape index: {}]   ;;  %s1120_s9 = inlined_call_operand.hbm [shape: f32[1,1,8], index: 9, kind: output, shape index: {}]  }
   0x1   :  { %15 = vsyncpa [#allocation6], 0 }
   0x2   :  { %16 = vsyncpa [#allocation9], 0 }
   0x3   :  { %17 = vsyncpa [#allocation12], 0 }
   0x4   :  { %18 = vsyncpa [#allocation4], 0  ;;  %s1003_s30 = smov [#allocation5]   ;;  %s1004_s11 = smov [#allocation8]  }
   0x5   :  { %s35_s10 = sshll.u32 %s1003_s30, 4  ;;  %s54_s12 = sshll.u32 %s1004_s11, 4  ;;  %s36_s10 = int_to_ptr.vmem [resolvable:$true] %s35_s10  ;;  %s55_s12 = int_to_ptr.vmem [resolvable:$true] %s54_s12 }
   0x6   :  { %s841_s13 = scalar_lea.vmem %s36_s10, 128  ;;  %p846_p1 = scmp.lt.s32.totalorder %s36_s10, %s36_s10 }
   0x7   :  { %p842_p0 = scmp.ne.s32.totalorder %s36_s10, %s841_s13  ;;  %p847_p2 = scmp.lt.s32.totalorder %s841_s13, %s841_s13 }
   0x9   :  { %p848_p3 = por %p847_p2, %p846_p1 }
   0xb   :  { %p849_p4 = pnand %p848_p3, %p842_p0 }
   0xd   :  { %852 = shalt.err (!%p849_p4)
}
   0xe   :  { %38 = dma.hbm_to_vmem [thread:$0]  %s1112_s1, 128, %s36_s10, [#allocation6]  }
   0xf   :  { %s861_s16 = scalar_lea.vmem %s55_s12, 640  ;;  %p866_p6 = scmp.lt.s32.totalorder %s55_s12, %s55_s12 }
  0x10   :  { %p862_p5 = scmp.ne.s32.totalorder %s55_s12, %s861_s16  ;;  %p867_p7 = scmp.lt.s32.totalorder %s861_s16, %s861_s16 }
  0x12   :  { %p868_p8 = por %p867_p7, %p866_p6 }
  0x14   :  { %p869_p9 = pnand %p868_p8, %p862_p5 }
  0x16   :  { %872 = shalt.err (!%p869_p9)
}
  0x17   :  { %s1005_s17 = smov 128   ;;  %s1006_s18 = smov 8  }
  0x18   :  { %60 = dma.hbm_to_vmem [thread:$0]  %s1114_s3, 640, %s55_s12, [#allocation9], %s1005_s17, %s1005_s17, %s1006_s18  }
  0x19   :  { %s1007_s21 = smov [#allocation11]   ;;  %s1008_s23 = smov [#allocation2]  }
  0x1a   :  { %s78_s22 = sshll.u32 %s1007_s21, 4  ;;  %s25_s1 = sshll.u32 %s1008_s23, 4  ;;  %s79_s22 = int_to_ptr.vmem [resolvable:$true] %s78_s22  ;;  %s26_s1 = int_to_ptr.vmem [resolvable:$true] %s25_s1 }
  0x1b   :  { %s881_s24 = scalar_lea.vmem %s79_s22, 1536  ;;  %p886_p11 = scmp.lt.s32.totalorder %s79_s22, %s79_s22 }
  0x1c   :  { %p882_p10 = scmp.ne.s32.totalorder %s79_s22, %s881_s24  ;;  %p887_p12 = scmp.lt.s32.totalorder %s881_s24, %s881_s24 }
  0x1e   :  { %p888_p13 = por %p887_p12, %p886_p11 }
  0x20   :  { %p889_p0 = pnand %p888_p13, %p882_p10 }
  0x22   :  { %892 = shalt.err (!%p889_p0)
}
  0x23   :  { %84 = dma.hbm_to_vmem [thread:$0]  %s1116_s5, 1536, %s79_s22, [#allocation12], %s1005_s17, %s1005_s17, %s1006_s18  }
  0x24   :  { %s901_s3 = scalar_lea.vmem %s26_s1, 128  ;;  %p906_p2 = scmp.lt.s32.totalorder %s26_s1, %s26_s1 }
  0x25   :  { %p902_p1 = scmp.ne.s32.totalorder %s26_s1, %s901_s3  ;;  %p907_p3 = scmp.lt.s32.totalorder %s901_s3, %s901_s3 }
  0x27   :  { %p908_p4 = por %p907_p3, %p906_p2 }
  0x29   :  { %p909_p5 = pnand %p908_p4, %p902_p1 }
  0x2b   :  { %912 = shalt.err (!%p909_p5)
}
  0x2c   :  { %28 = dma.hbm_to_vmem [thread:$0]  %s1111_s0, 128, %s26_s1, [#allocation3]  }
  0x2d   :  { %s1009_s29 = smov [#allocation7]   ;;  %s1010_s10 = smov [#allocation10]  }
  0x2e   :  { %s45_s30 = sshll.u32 %s1009_s29, 4  ;;  %s66_s11 = sshll.u32 %s1010_s10, 4  ;;  %s46_s30 = int_to_ptr.vmem [resolvable:$true] %s45_s30  ;;  %s67_s11 = int_to_ptr.vmem [resolvable:$true] %s66_s11 }
  0x2f   :  { %s921_s12 = scalar_lea.vmem %s46_s30, 128  ;;  %p926_p7 = scmp.lt.s32.totalorder %s46_s30, %s46_s30 }
  0x30   :  { %p922_p6 = scmp.ne.s32.totalorder %s46_s30, %s921_s12  ;;  %p927_p8 = scmp.lt.s32.totalorder %s921_s12, %s921_s12 }
  0x32   :  { %p928_p9 = por %p927_p8, %p926_p7 }
  0x34   :  { %p929_p10 = pnand %p928_p9, %p922_p6 }
  0x36   :  { %932 = shalt.err (!%p929_p10)
}
  0x37   :  { %48 = dma.hbm_to_vmem [thread:$0]  %s1113_s2, 128, %s46_s30, [#allocation6]  }
  0x38   :  { %s941_s14 = scalar_lea.vmem %s67_s11, 384  ;;  %p946_p12 = scmp.lt.s32.totalorder %s67_s11, %s67_s11 }
  0x39   :  { %p942_p11 = scmp.ne.s32.totalorder %s67_s11, %s941_s14  ;;  %p947_p13 = scmp.lt.s32.totalorder %s941_s14, %s941_s14 }
  0x3b   :  { %p948_p0 = por %p947_p13, %p946_p12 }
  0x3d   :  { %p949_p1 = pnand %p948_p0, %p942_p11 }
  0x3f   :  { %952 = shalt.err (!%p949_p1)
}
  0x40   :  { %72 = dma.hbm_to_vmem [thread:$0]  %s1115_s4, 384, %s67_s11, [#allocation9], %s1005_s17, %s1005_s17, %s1006_s18  }
  0x41   :  { %s1011_s16 = smov [#allocation13]  }
  0x42   :  { %s92_s19 = sshll.u32 %s1011_s16, 4  ;;  %s93_s19 = int_to_ptr.vmem [resolvable:$true] %s92_s19 }
  0x43   :  { %s961_s20 = scalar_lea.vmem %s93_s19, 2048  ;;  %p966_p3 = scmp.lt.s32.totalorder %s93_s19, %s93_s19 }
  0x44   :  { %p962_p2 = scmp.ne.s32.totalorder %s93_s19, %s961_s20  ;;  %p967_p4 = scmp.lt.s32.totalorder %s961_s20, %s961_s20 }
  0x46   :  { %p968_p5 = por %p967_p4, %p966_p3 }
  0x48   :  { %p969_p6 = pnand %p968_p5, %p962_p2 }
  0x4a   :  { %972 = shalt.err (!%p969_p6)
}
  0x4b   :  { %s1012_s2 = smov 64   ;;  %s1013_s21 = smov 4  }
  0x4c   :  { %98 = dma.hbm_to_vmem [thread:$0]  %s1118_s7, 2048, %s93_s19, [#allocation12], %s1012_s2, %s1012_s2, %s1013_s21  }
  0x4d   :  { %993 = dma.done.wait [#allocation3], 128  }
  0x4e   :  { %994 = vsyncadd [#allocation3], 4294967168 }
  0x4f   :  { %995 = dma.done.wait [#allocation6], 256  }
  0x50   :  { %996 = vsyncadd [#allocation6], 4294967040 }
  0x51   :  { %997 = dma.done.wait [#allocation9], 1024  }
  0x52   :  { %998 = vsyncadd [#allocation9], 4294966272 }
  0x53   :  { %999 = dma.done.wait [#allocation12], 3584  }
  0x54   :  { %1000 = vsyncadd [#allocation12], 4294963712  ;;  %v1014_v0 = vmov 0   ;;  %v138_v1 = vld [vmem:[#allocation10 + $0x10] sm:$0x33]  ;;  %vm158_vm0 = vcmask 1041408   ;;  %v402_v57 = vlaneseq }
  0x55   :  { %197 = vmatprep.mubr.bf16.mxu0 %v1014_v0  ;;  %273 = vmatprep.mubr.bf16.mxu1 %v1014_v0  ;;  %v135_v2 = vld [vmem:[#allocation8 + $0x20] sm:$0x33]  ;;  %v695_v3 = vcombine.high %v138_v1, %v138_v1  ;;  %v694_v5 = vcombine.low %v138_v1, %v138_v1  ;;  %v786_v7 = vld [vmem:[#allocation10 + $0x4] ss:$8 sps:$4 sm:$0xff]   ;;  %v790_v9 = vld [vmem:[#allocation10] ss:$8 sps:$4 sm:$0xff]  }
  0x56   :  { %v703_v4 = vcombine.high %v135_v2, %v135_v2  ;;  %v702_v6 = vcombine.low %v135_v2, %v135_v2  ;;  %v788_v8 = vld [vmem:[#allocation8 + $0x14] ss:$8 sps:$4 sm:$0xff]   ;;  %v791_v12 = vld [vmem:[#allocation8 + $0x10] ss:$8 sps:$4 sm:$0xff]   ;;  %v792_v14 = vld [vmem:[#allocation8 + $0x4] ss:$8 sps:$4 sm:$0xff]  }
  0x57   :  { %696 = vmatprep.subr.msk.bf16.mxu0 %vm158_vm0, %v695_v3  ;;  %v160_v10 = vsel %vm158_vm0, %v694_v5, 0  ;;  %v125_v13 = vld [vmem:[#allocation5] sm:$0xff]  ;;  %v797_v18 = vld [vmem:[#allocation8] ss:$8 sps:$4 sm:$0xff]   ;;  %vm154_vm1 = vcmask 162816   ;;  %vm231_vm2 = vcmask 293888  }
  0x58   :  { %704 = vmatprep.subr.msk.bf16.mxu1 %vm158_vm0, %v703_v4  ;;  %v236_v11 = vsel %vm158_vm0, %v702_v6, 0  ;;  %178 = vmatpush1.bf16.msra.mxu0 %v160_v10  ;;  %v796_v15 = vld [vmem:[#allocation11 + $0x54] ss:$8 sps:$4 sm:$0xff]   ;;  %v126_v16 = vpack.c.bf16 %v125_v13, %v125_v13  ;;  %v794_v17 = vld [vmem:[#allocation11 + $0x50] ss:$8 sps:$4 sm:$0xff]   ;;  %v123_v19 = vld [vmem:[#allocation2] sm:$0xff] }
  0x59   :  { %252 = vmatpush1.bf16.msra.mxu1 %v236_v11  ;;  %179 = vmatprep.subr.bf16.mxu0 %v786_v7  ;;  %v800_v20 = vld [vmem:[#allocation11 + $0x44] ss:$8 sps:$4 sm:$0xff]   ;;  %v124_v21 = vpack.c.bf16 %v123_v19, %v123_v19  ;;  %v798_v22 = vld [vmem:[#allocation11 + $0x40] ss:$8 sps:$4 sm:$0xff]   ;;  %v803_v23 = vld [vmem:[#allocation11 + $0x34] ss:$8 sps:$4 sm:$0xff]  }
  0x5a   :  { %253 = vmatprep.subr.bf16.mxu1 %v788_v8  ;;  %v801_v24 = vld [vmem:[#allocation11 + $0x30] ss:$8 sps:$4 sm:$0xff]   ;;  %v806_v25 = vld [vmem:[#allocation11 + $0x24] ss:$8 sps:$4 sm:$0xff]   ;;  %v804_v26 = vld [vmem:[#allocation11 + $0x20] ss:$8 sps:$4 sm:$0xff]  }
  0x5b   :  { %v809_v27 = vld [vmem:[#allocation11 + $0x14] ss:$8 sps:$4 sm:$0xff]   ;;  %v807_v28 = vld [vmem:[#allocation11 + $0x10] ss:$8 sps:$4 sm:$0xff]   ;;  %v812_v29 = vld [vmem:[#allocation11 + $0x4] ss:$8 sps:$4 sm:$0xff]  }
  0x5c   :  { %180 = vmatpush1.bf16.msra.mxu0 %v790_v9  ;;  %v810_v30 = vld [vmem:[#allocation11] ss:$8 sps:$4 sm:$0xff]   ;;  %v127_v31 = vld [vmem:[#allocation7] sm:$0xff]  ;;  %vm354_vm3 = vcmask 785408   ;;  %v815_v35 = vld [vmem:[#allocation13 + $0x70] sm:$0xff]   ;;  %v403_v58 = vshrl.u32 %v402_v57, 7 }
  0x5d   :  { %254 = vmatpush1.bf16.msra.mxu1 %v791_v12  ;;  %362 = vmatprep.subr.bf16.mxu0 %v796_v15  ;;  %v128_v32 = vpack.c.bf16 %v127_v31, %v127_v31  ;;  %v813_v33 = vld [vmem:[#allocation13 + $0x78] sm:$0xff]   ;;  %v816_v36 = vld [vmem:[#allocation13 + $0x30] sm:$0xff]   ;;  %v817_v37 = vld [vmem:[#allocation13 + $0x68] sm:$0xff]   ;;  %vm1016_vm4 = vmmov 0   ;;  %vm672_vm5 = vcmask 57344  }
  0x5e   :  { %255 = vmatprep.subr.bf16.mxu1 %v792_v14  ;;  %v814_v34 = vld [vmem:[#allocation13 + $0x38] sm:$0xff]   ;;  %v818_v38 = vld [vmem:[#allocation13 + $0x28] sm:$0xff]   ;;  %v819_v39 = vld [vmem:[#allocation13 + $0x60] sm:$0xff]   ;;  %v404_v59 = vsub.s32 0, %v403_v58  ;;  %v408_v61 = vsub.s32 1, %v403_v58  ;;  %v1015_v14 = vmov 0.0  }
  0x5f   :  { %697 = vmatmul.mubr.msk.bf16.vlgmr.msra.gmra.mxu0 %vm154_vm1, %v126_v16  ;;  %v820_v40 = vld [vmem:[#allocation13 + $0x20] sm:$0xff]   ;;  %v821_v41 = vld [vmem:[#allocation13 + $0x58] sm:$0xff]   ;;  %v823_v43 = vld [vmem:[#allocation13 + $0x50] sm:$0xff]  }
  0x60   :  { %363 = vmatpush1.bf16.msra.mxu0 %v794_v17  ;;  %390 = vmatprep.mubr.bf16.mxu0 %v1014_v0  ;;  %v822_v42 = vld [vmem:[#allocation13 + $0x18] sm:$0xff]   ;;  %v824_v44 = vld [vmem:[#allocation13 + $0x10] sm:$0xff]   ;;  %v825_v45 = vld [vmem:[#allocation13 + $0x48] sm:$0xff]  }
  0x61   :  { %256 = vmatpush1.bf16.msra.mxu1 %v797_v18  ;;  %364 = vmatprep.subr.bf16.mxu0 %v800_v20  ;;  %v826_v46 = vld [vmem:[#allocation13 + $0x8] sm:$0xff]   ;;  %v827_v47 = vld [vmem:[#allocation13 + $0x40] sm:$0xff]  }
  0x62   :  { %737 = vmatprep.subr.bf16.mxu1 %v813_v33  ;;  %v828_v48 = vld [vmem:[#allocation13] sm:$0xff]   ;;  %v129_v60 = vld [vmem:[%s1117_s6] sm:$0x3] }
  0x63   :  { %v405_v63 = vrot.slane %v129_v60, %v404_v59  ;;  %v409_v3 = vrot.slane %v129_v60, %v408_v61  ;;  %v719_v17 = vld [vmem:[%s1119_s8] ss:$0 sm:$0xff]  ;;  %s1018_s8 = smov [#allocation14]  }
  0x64   :  { %705 = vmatmul.mubr.msk.bf16.vlgmr.msra.gmra.mxu1 %vm231_vm2, %v124_v21  ;;  %365 = vmatpush1.bf16.msra.mxu0 %v798_v22  ;;  %s680_s18 = sshll.u32 %s1018_s8, 4  ;;  %s681_s18 = int_to_ptr.vmem [resolvable:$true] %s680_s18 }
  0x65   :  { %366 = vmatprep.subr.bf16.mxu0 %v803_v23  ;;  %738 = vmatpush3.bf16.msra.mxu1 %v814_v34  ;;  %s973_s1 = scalar_lea.vmem %s681_s18, 16  ;;  %s977_s24 = scalar_lea.vmem %s681_s18, 32 }
  0x66   :  { %739 = vmatprep.subr.bf16.mxu1 %v815_v35  ;;  %p974_p7 = scmp.ne.s32.totalorder %s681_s18, %s973_s1  ;;  %p978_p8 = scmp.lt.s32.totalorder %s681_s18, %s681_s18 }
  0x67   :  { %p979_p9 = scmp.lt.s32.totalorder %s977_s24, %s973_s1 }
  0x68   :  { %367 = vmatpush1.bf16.msra.mxu0 %v801_v24 }
  0x69   :  { %368 = vmatprep.subr.bf16.mxu0 %v806_v25  ;;  %740 = vmatpush3.bf16.msra.mxu1 %v816_v36  ;;  %v1017_v25 = vmov 0.5   ;;  %p980_p10 = por %p979_p9, %p978_p8 }
  0x6a   :  { %741 = vmatprep.subr.bf16.mxu1 %v817_v37 }
  0x6b   :  { %p981_p11 = pnand %p980_p10, %p974_p7 }
  0x6c   :  { %369 = vmatpush1.bf16.msra.mxu0 %v804_v26 }
  0x6d   :  { %370 = vmatprep.subr.bf16.mxu0 %v809_v27  ;;  %742 = vmatpush3.bf16.msra.mxu1 %v818_v38 }
  0x6e   :  { %743 = vmatprep.subr.bf16.mxu1 %v819_v39 }
  0x70   :  { %371 = vmatpush1.bf16.msra.mxu0 %v807_v28 }
  0x71   :  { %372 = vmatprep.subr.bf16.mxu0 %v812_v29  ;;  %744 = vmatpush3.bf16.msra.mxu1 %v820_v40 }
  0x72   :  { %745 = vmatprep.subr.bf16.mxu1 %v821_v41 }
  0x74   :  { %373 = vmatpush1.bf16.msra.mxu0 %v810_v30 }
  0x75   :  { %746 = vmatpush3.bf16.msra.mxu1 %v822_v42  ;;  %761 = vmatprep.subr.mxu0 %v1015_v14 }
  0x76   :  { %747 = vmatprep.subr.bf16.mxu1 %v823_v43 }
  0x77   :  { %718 = vmatmul.mubr.msk.bf16.vlgmr.msra.gmra.mxu0 %vm354_vm3, %v128_v32 }
  0x78   :  { %763 = vmatprep.mubr.msk.f32.mxu0 %vm1016_vm4, %v1015_v14 }
  0x79   :  { %748 = vmatpush3.bf16.msra.mxu1 %v824_v44 }
  0x7a   :  { %749 = vmatprep.subr.bf16.mxu1 %v825_v45 }
  0x7d   :  { %750 = vmatpush3.bf16.msra.mxu1 %v826_v46 }
  0x7e   :  { %751 = vmatprep.subr.bf16.mxu1 %v827_v47 }
  0x81   :  { %752 = vmatpush3.bf16.msra.mxu1 %v828_v48 }
 0x11f   :  { %v199_v49 = vpop.f32.mrf.mxu0 }
 0x121   :  { %v201_v50 = vpop.f32.mrf.mxu0 }
 0x123   :  { %v203_v51 = vpop.f32.mrf.mxu0 }
 0x124   :  { %v275_v52 = vpop.f32.mrf.mxu1 }
 0x125   :  { %v204_v53 = vpop.f32.mrf.mxu0  ;;  %v276_v62 = vadd.f32 %v275_v52, %v199_v49 }
 0x126   :  { %v277_v54 = vpop.f32.mrf.mxu1 }
 0x127   :  { %v278_v1 = vadd.f32 %v277_v54, %v201_v50 }
 0x128   :  { %v279_v55 = vpop.f32.mrf.mxu1 }
 0x12a   :  { %v280_v56 = vpop.f32.mrf.mxu1 }
 0x137   :  { %v392_v0 = vpop.f32.mrf.mxu0 }
 0x138   :  { %v399_v2 = vadd.f32 %v392_v0, %v276_v62 }
 0x139   :  { %v394_v4 = vpop.f32.mrf.mxu0 }
 0x13a   :  { %v412_v5 = vadd.f32 %v405_v63, %v399_v2  ;;  %v400_v6 = vadd.f32 %v394_v4, %v278_v1 }
 0x13b   :  { %v396_v7 = vpop.f32.mrf.mxu0 }
 0x13c   :  { %v413_v8 = vadd.f32 %v409_v3, %v400_v6  ;;  %v414_v9 = vmax.f32 %v412_v5, 0.0 }
 0x13d   :  { %v397_v10 = vpop.f32.mrf.mxu0 }
 0x13e   :  { %v415_v11 = vmax.f32 %v413_v8, 0.0  ;;  %v416_v13 = vpack.c.bf16 %v414_v9, %v414_v9 }
 0x140   :  { %v417_v12 = vpack.c.bf16 %v415_v11, %v415_v11 }
 0x142   :  { %584 = vmatprep.mubr.bf16.mxu1 %v417_v12 }
 0x143   :  { %585 = vmatmul.mubr.bf16.vlgmr.msra.gmra.mxu1 %v416_v13 }
 0x203   :  { %v753_v15 = vpop.f32.mrf.mxu1 }
 0x205   :  { %v754_v16 = vpop.f32.mrf.mxu1 }
 0x206   :  { %v755_v18 = vadd.f32 %v754_v16, %v753_v15 }
 0x207   :  { %v756_v19 = vpop.f32.mrf.mxu1 }
 0x208   :  { %v587_v20 = vadd.f32 %v755_v18, %v719_v17 }
 0x209   :  { %v757_v21 = vpop.f32.mrf.mxu1 }
 0x20a   :  { %v592_v22 = vmax.f32 %v587_v20, 0.0 }
 0x20c   :  { %593 = vrot.lane.b32.xlu0 %v592_v22, %s1012_s2 }
 0x27e   :  { %v594_v23 = vpop.permute.xlu0 %593 }
 0x27f   :  { %v595_v24 = vmul.f32 %v594_v23, %v592_v22 }
 0x281   :  { %762 = vmatpush3.xpose.msra.mxu0 %v595_v24 }
 0x284   :  { %764 = vmatmul.mubr.f32.vlgmr.msra.gmra.mxu0 %v1017_v25 }
 0x344   :  { %v662_v26 = vpop.f32.mrf.mxu0 }
 0x345   :  { %v736_v27 = vmul.f32 -1.442695, %v662_v26 }
 0x346   :  { %v765_v28 = vpop.f32.mrf.mxu0 }
 0x347   :  { %829 = vpow2.f32 %v736_v27 }
 0x354   :  { %v830_v29 = vpop.eup %829 }
 0x355   :  { %v669_v30 = vadd.f32 1.0, %v830_v29 }
 0x357   :  { %831 = vrcp.f32 %v669_v30 }
 0x364   :  { %v832_v31 = vpop.eup %831 }
 0x365   :  { %673 = vst.msk [vmem:[#allocation14] sm:$0x1] %vm672_vm5, %v832_v31 }
 0x366   :  { %984 = shalt.err (!%p981_p11)
}
 0x367   :  { %683 = dma.vmem_to_hbm [thread:$0]  %s681_s18, 16, %s1120_s9, [#allocation4]  }
 0x368   :  { %1001 = dma.done.wait [#allocation4], 16  }
 0x369   :  { %1002 = vsyncadd [#allocation4], 4294967280 }
 0x36a   :  { %687 = vsyncpa [#allocation3], 1 }
 0x36b   :  { %688 = vsyncpa [#allocation6], 1 }
 0x36c   :  { %689 = vsyncpa [#allocation9], 1 }
 0x36d   :  { %690 = vsyncpa [#allocation12], 1 }
 0x36e   :  { %691 = vsyncpa [#allocation4], 1 }

</bundles_post_ra>
